<compile_context>
chip_gen: v7x
topology: tpu7x:2x2x1
jax: 0.10.0
libtpu: 0.0.40
codegen_flags: <defaults>
</compile_context>

<pallas_src>
import functools
import math

import jax
import jax.numpy as jnp
from jax.experimental import pallas as pl
from jax.experimental.pallas import tpu as pltpu

GN_EPS = 1e-5                       # PyTorch GroupNorm default eps
_INV_SQRT2 = 1.0 / math.sqrt(2.0)
_TANH_C = math.sqrt(2.0 / math.pi)


def _conv_gn_gelu_kernel(patches_ref, w_ref, ss_ref, o_ref, *, approximate):
    """Fused conv + folded-GroupNorm-affine + GELU for one (b, t) tile.

    patches_ref: (1, K, T_tile)  im2col patches, time in lanes
    w_ref:       (C, K)          conv weight (in_channels == 1 squeezed)
    ss_ref:      (1, C, 2)       [:, :, 0] = scale, [:, :, 1] = folded shift
    o_ref:       (1, C, T_tile)  output tile directly in NCL layout
    """
    ss = ss_ref[0]                               # (C, 2) f32
    w_s = w_ref[...] * ss[:, 0:1]                # fold GN scale into weights (C, K)
    y = jnp.dot(w_s, patches_ref[0], preferred_element_type=jnp.float32)
    y = y + ss[:, 1:2]                           # folded conv bias + GN shift
    if approximate:
        # tanh GELU: EUP path (otherwise-idle slot); ~1e-3 abs diff vs erf.
        y = 0.5 * y * (1.0 + jnp.tanh(_TANH_C * (y + 0.044715 * (y * y * y))))
    else:
        # exact GELU: 0.5 * x * (1 + erf(x / sqrt(2)))  (matches PyTorch)
        y = 0.5 * y * (1.0 + jax.lax.erf(y * _INV_SQRT2))
    o_ref[0] = y.astype(o_ref.dtype)


def _pick_t_tile(T, target):
    """Single exact tile for short sequences; 128-aligned tile otherwise."""
    if T <= target:
        return T
    return max(128, (target // 128) * 128)


@functools.partial(
    jax.jit,
    static_argnames=("stride", "t_tile_target", "approximate_gelu",
                     "out_dtype", "vmem_limit_bytes"))
def wav2vec2_groupnorm_conv_layer(x, weight, bias, gamma, beta, *, stride,
                                  t_tile_target=4096, approximate_gelu=False,
                                  out_dtype=None, vmem_limit_bytes=None):
    """x: (B, 1, L) -> (B, C_out, T_out), matching the PyTorch module."""
    B, C_in, L = x.shape
    assert C_in == 1, "layer_id=0 => in_conv_dim == 1"
    C, _, K = weight.shape
    T = (L - K) // stride + 1
    out_dtype = x.dtype if out_dtype is None else out_dtype

    T_tile = _pick_t_tile(T, t_tile_target)
    nT = pl.cdiv(T, T_tile)
    T_pad = nT * T_tile

    # ---- im2col via K static strided slices (no XLA gather) ---------------
    # patches[b, k, t] = x[b, 0, t*stride + k]; padded tail columns are zeros
    # (excluded from stats; their pass-2 writes fall outside the output).
    x1 = x[:, 0, :]
    L_need = (T_pad - 1) * stride + K
    if L_need > L:
        x1 = jnp.pad(x1, ((0, 0), (0, L_need - L)))
    cols = [
        jax.lax.slice(x1, (0, k), (B, k + (T_pad - 1) * stride + 1), (1, stride))
        for k in range(K)
    ]
    patches = jnp.stack(cols, axis=1)                            # (B, K, T_pad)

    w2 = weight[:, 0, :].astype(jnp.float32)                     # (C, K)
    b1 = bias.astype(jnp.float32)                                 # (C,)

    # ---- GroupNorm stats from K-dim patch moments (tiny XLA, O(K^2*T)) ----
    hi = jax.lax.Precision.HIGHEST                                # negligible cost at K=10
    pv = patches[:, :, :T].astype(jnp.float32)                    # valid columns only
    S1 = jnp.sum(pv, axis=2)                                      # (B, K)
    S2 = jnp.einsum("bkt,bjt->bkj", pv, pv, precision=hi)         # (B, K, K)
    wS1 = jnp.einsum("ck,bk->bc", w2, S1, precision=hi)           # (B, C)
    wS2 = jnp.einsum("bkj,cj->bck", S2, w2, precision=hi)         # (B, C, K)
    wS2w = jnp.einsum("bck,ck->bc", wS2, w2, precision=hi)        # (B, C)

    inv_T = 1.0 / T
    mean = (wS1 + T * b1[None, :]) * inv_T                        # E[y]       (B, C)
    ey2 = (wS2w + 2.0 * b1[None, :] * wS1 + T * b1[None, :] ** 2) * inv_T
    var = ey2 - mean * mean                                       # biased variance
    scale = gamma.astype(jnp.float32)[None, :] * jax.lax.rsqrt(var + GN_EPS)
    shift = beta.astype(jnp.float32)[None, :] - mean * scale
    shift_total = shift + scale * b1[None, :]                     # fold conv bias too
    ss = jnp.stack([scale, shift_total], axis=-1)                 # (B, C, 2) packed

    # ---- fused conv + norm + GELU kernel, NCL output -----------------------
    out_itemsize = jnp.dtype(out_dtype).itemsize
    conv_flops = 2 * B * T * K * C
    cost = pl.CostEstimate(
        flops=conv_flops + 8 * B * T * C,
        transcendentals=B * T * C,
        bytes_accessed=(4 * B * K * T_pad + 4 * C * K + 4 * B * C * 2
                        + out_itemsize * B * C * T))

    cp_kwargs = dict(dimension_semantics=("parallel", "parallel"))
    if vmem_limit_bytes is not None:
        cp_kwargs["vmem_limit_bytes"] = vmem_limit_bytes

    out = pl.pallas_call(
        functools.partial(_conv_gn_gelu_kernel, approximate=approximate_gelu),
        out_shape=jax.ShapeDtypeStruct((B, C, T), out_dtype),
        grid_spec=pltpu.PrefetchScalarGridSpec(
            num_scalar_prefetch=0,
            grid=(B, nT),
            in_specs=[
                pl.BlockSpec((1, K, T_tile), lambda b, t: (b, 0, t)),
                pl.BlockSpec((C, K), lambda b, t: (0, 0)),
                pl.BlockSpec((1, C, 2), lambda b, t: (b, 0, 0)),
            ],
            out_specs=pl.BlockSpec((1, C, T_tile), lambda b, t: (b, 0, t)),
        ),
        compiler_params=pltpu.CompilerParams(**cp_kwargs),
        cost_estimate=cost,
    )(patches, w2, ss)

    return out


def _reference(x, weight, bias, gamma, beta, stride):
    """Pure-JAX reference matching the PyTorch forward (exact erf GELU)."""
    y = jax.lax.conv_general_dilated(
        x, weight, window_strides=(stride,), padding="VALID",
        dimension_numbers=("NCH", "OIH", "NCH"))
    y = y + bias[None, :, None]
    mean = jnp.mean(y, axis=2, keepdims=True)
    var = jnp.mean((y - mean) ** 2, axis=2, keepdims=True)
    y = (y - mean) / jnp.sqrt(var + GN_EPS)
    y = y * gamma[None, :, None] + beta[None, :, None]
    return 0.5 * y * (1.0 + jax.lax.erf(y / jnp.sqrt(2.0)))


if __name__ == "__main__":
    # Small config consistent with wav2vec2 layer 0:
    #   conv_dim[0]=32 (toy; real=512), conv_kernel[0]=10, conv_stride[0]=5,
    #   conv_bias=True, feat_extract_activation="gelu"
    B, L = 2, 128
    C_OUT, K, STRIDE = 32, 10, 5

    key = jax.random.PRNGKey(0)
    kx, kw, kb, kg, kbeta = jax.random.split(key, 5)

    x = jax.random.normal(kx, (B, 1, L), dtype=jnp.float32)
    weight = jax.random.normal(kw, (C_OUT, 1, K), dtype=jnp.float32) * 0.1
    bias = jax.random.normal(kb, (C_OUT,), dtype=jnp.float32) * 0.1
    gamma = 1.0 + 0.1 * jax.random.normal(kg, (C_OUT,), dtype=jnp.float32)
    beta = 0.1 * jax.random.normal(kbeta, (C_OUT,), dtype=jnp.float32)

    ref = _reference(x, weight, bias, gamma, beta, STRIDE)

    # Default path: exact erf GELU (matches the PyTorch module).
    out = wav2vec2_groupnorm_conv_layer(
        x, weight, bias, gamma, beta, stride=STRIDE)
    out = jax.block_until_ready(out)
    assert out.shape == ref.shape == (B, C_OUT, (L - K) // STRIDE + 1)
    assert jnp.allclose(out, ref, rtol=1e-4, atol=1e-4), "mismatch vs reference"

    # Optional fast path: tanh GELU on the EUP (looser tolerance by design).
    out_fast = wav2vec2_groupnorm_conv_layer(
        x, weight, bias, gamma, beta, stride=STRIDE, approximate_gelu=True)
    out_fast = jax.block_until_ready(out_fast)
    assert jnp.allclose(out_fast, ref, rtol=1e-2, atol=1e-2), "tanh-GELU path mismatch"

    print("KERNEL_OK")
</pallas_src>

<mosaic_0001>
module attributes {stable_mosaic.version = 11 : i64} {
  func.func @_conv_gn_gelu_kernel(%arg0: i32, %arg1: i32, %arg2: memref<1x10x24xf32, #tpu.memory_space<vmem>>, %arg3: memref<32x10xf32, #tpu.memory_space<vmem>>, %arg4: memref<1x32x2xf32, #tpu.memory_space<vmem>>, %arg5: memref<1x32x24xf32, #tpu.memory_space<vmem>>) attributes {dimension_semantics = [#tpu.dimension_semantics<parallel>, #tpu.dimension_semantics<parallel>], iteration_bounds = array<i64: 2, 1>, scalar_prefetch = 0 : i64, scratch_operands = 0 : i64, tpu.core_type = #tpu.core_type<tc>, window_params = [{transform_indices = @transform_0, window_bounds = array<i64: 1, 10, 24>}, {pipeline_mode = #tpu.pipeline_mode<synchronous>, transform_indices = @transform_1, window_bounds = array<i64: 32, 10>}, {transform_indices = @transform_2, window_bounds = array<i64: 1, 32, 2>}, {transform_indices = @transform_3, window_bounds = array<i64: 1, 32, 24>}]} {
    %c0 = arith.constant 0 : index
    %c0_0 = arith.constant 0 : index
    %c0_1 = arith.constant 0 : index
    %0 = vector.load %arg4[%c0, %c0_0, %c0_1] : memref<1x32x2xf32, #tpu.memory_space<vmem>>, vector<1x32x2xf32>
    %1 = vector.shape_cast %0 : vector<1x32x2xf32> to vector<32x2xf32>
    %c0_2 = arith.constant 0 : index
    %c0_3 = arith.constant 0 : index
    %2 = vector.load %arg3[%c0_2, %c0_3] : memref<32x10xf32, #tpu.memory_space<vmem>>, vector<32x10xf32>
    %3 = vector.extract_strided_slice %1 {offsets = [0, 0], sizes = [32, 1], strides = [1, 1]} : vector<32x2xf32> to vector<32x1xf32>
    %4 = vector.broadcast %3 : vector<32x1xf32> to vector<32x10xf32>
    %5 = arith.mulf %2, %4 : vector<32x10xf32>
    %c0_4 = arith.constant 0 : index
    %c0_5 = arith.constant 0 : index
    %c0_6 = arith.constant 0 : index
    %6 = vector.load %arg2[%c0_4, %c0_5, %c0_6] : memref<1x10x24xf32, #tpu.memory_space<vmem>>, vector<1x10x24xf32>
    %7 = vector.shape_cast %6 : vector<1x10x24xf32> to vector<10x24xf32>
    %cst = arith.constant dense<0.000000e+00> : vector<32x24xf32>
    %8 = tpu.matmul %5, %7, %cst {dimension_numbers = #tpu.dot_dimension_numbers<[1], [0], [0], [1], [0, 0, 1, 1], [], []>} : vector<32x10xf32>, vector<10x24xf32>, vector<32x24xf32> -> vector<32x24xf32>
    %9 = vector.extract_strided_slice %1 {offsets = [0, 1], sizes = [32, 1], strides = [1, 1]} : vector<32x2xf32> to vector<32x1xf32>
    %10 = vector.broadcast %9 : vector<32x1xf32> to vector<32x24xf32>
    %11 = arith.addf %8, %10 : vector<32x24xf32>
    %cst_7 = arith.constant 5.000000e-01 : f32
    %12 = vector.broadcast %cst_7 : f32 to vector<32x24xf32>
    %13 = arith.mulf %12, %11 : vector<32x24xf32>
    %cst_8 = arith.constant 0.707106769 : f32
    %14 = vector.broadcast %cst_8 : f32 to vector<32x24xf32>
    %15 = arith.mulf %11, %14 : vector<32x24xf32>
    %16 = math.erf %15 : vector<32x24xf32>
    %cst_9 = arith.constant 1.000000e+00 : f32
    %17 = vector.broadcast %cst_9 : f32 to vector<32x24xf32>
    %18 = arith.addf %17, %16 : vector<32x24xf32>
    %19 = arith.mulf %13, %18 : vector<32x24xf32>
    %c0_10 = arith.constant 0 : index
    %c0_11 = arith.constant 0 : index
    %c0_12 = arith.constant 0 : index
    %20 = vector.load %arg5[%c0_10, %c0_11, %c0_12] : memref<1x32x24xf32, #tpu.memory_space<vmem>>, vector<1x32x24xf32>
    %21 = vector.shape_cast %20 : vector<1x32x24xf32> to vector<32x24xf32>
    %22 = vector.shape_cast %19 : vector<32x24xf32> to vector<1x32x24xf32>
    tpu.vector_store %arg5[%c0_10, %c0_11, %c0_12], %22 {strides = array<i32>} : memref<1x32x24xf32, #tpu.memory_space<vmem>>, vector<1x32x24xf32>,
    return
  }
  func.func @transform_0(%arg0: i32, %arg1: i32) -> (i32, i32, i32) {
    %c0_i32 = arith.constant 0 : i32
    %c0_i32_0 = arith.constant 0 : i32
    return %arg0, %c0_i32, %arg1 : i32, i32, i32
  }
  func.func @transform_1(%arg0: i32, %arg1: i32) -> (i32, i32) {
    %c0_i32 = arith.constant 0 : i32
    %c0_i32_0 = arith.constant 0 : i32
    %c0_i32_1 = arith.constant 0 : i32
    return %c0_i32, %c0_i32_0 : i32, i32
  }
  func.func @transform_2(%arg0: i32, %arg1: i32) -> (i32, i32, i32) {
    %c0_i32 = arith.constant 0 : i32
    %c0_i32_0 = arith.constant 0 : i32
    %c0_i32_1 = arith.constant 0 : i32
    return %arg0, %c0_i32, %c0_i32_0 : i32, i32, i32
  }
  func.func @transform_3(%arg0: i32, %arg1: i32) -> (i32, i32, i32) {
    %c0_i32 = arith.constant 0 : i32
    %c0_i32_0 = arith.constant 0 : i32
    return %arg0, %c0_i32, %arg1 : i32, i32, i32
  }
}

</mosaic_0001>

<bundles_post_ra>
// kernel: wav2vec2_groupnorm_conv_layer.1
= control target key start
LH: loop header
LB: loop body
LE: loop exit
PB: predicated region body
PF: predicated region fallthrough
CT: control target
= control target key end

     0   :  { %s625_s12 = smov 0   ;;  %s627_s13 = smov 0   ;;  %s685_s0 = inlined_call_operand.vmem [shape: f32[2,10,24], index: 0, kind: input, shape index: {}]   ;;  %s686_s1 = inlined_call_operand.vmem [shape: f32[32,10], index: 1, kind: input, shape index: {}]   ;;  %s687_s2 = inlined_call_operand.vmem [shape: f32[2,32,2], index: 2, kind: input, shape index: {}]   ;;  %s688_s3 = inlined_call_operand.vmem [shape: f32[2,32,24], index: 3, kind: output, shape index: {}]  }
   0x1   :  { %s629_s14 = smov 0  }
   0x2 LB: > { %s25_s15 = sadd.s32 1, %s596_s13  ;;  %p498_p0 = scmp.ge.s32.totalorder %s600_s14, 1  ;;  %s600_s14 = sphi %s629_s14, %s13_s14   ;;  %s596_s13 = sphi %s627_s13, %s690_s13   ;;  %s592_s12 = sphi %s625_s12, %s689_s12  }
   0x3   : > { %p27_p1 = scmp.ge.s32.totalorder %s25_s15, 2  ;;  %p166_p2 = scmp.lt.s32.totalorder %s600_s14, 3 }
   0x5   : > { %s692_s15 = smov (%p27_p1, %s25_s15), 0  ;;  %p167_p3 = pnand %p498_p0, %p166_p2 }
   0x6   : > { %p201_p4 = scmp.lt.s32.totalorder (!%p167_p3), %s592_s12, 1  ;;  %v602_v0 = vmov (!%p167_p3), 0   ;;  %vm285_vm0 = vcmask (!%p167_p3), 1041408   ;;  %vm603_vm1 = vmmov (!%p167_p3), 1   ;;  %v604_v8 = vmov (!%p167_p3), 1   ;;  %v227_v9 = vld [vmem:[%s686_s1 + $0x8] sm:$0xff] (!%p167_p3) }
   0x7   : > { %170 = sbr.rel (%p167_p3) target bundleno = 386 (0x182), region = 32  ;;  %567 = vset.pattern.permute.xlu1 (!%p167_p3), %v602_v0  ;;  %566 = vset.pattern.permute.xlu0 (!%p167_p3), %v602_v0  ;;  %vm532_vm2 = vmpackc.low (!%p167_p3), %vm285_vm0, %vm603_vm1  ;;  %v226_v10 = vld [vmem:[%s686_s1] sm:$0xff] (!%p167_p3)  ;;  %vm272_vm3 = vcmask (!%p167_p3), 80896   ;;  %v229_v15 = vld [vmem:[%s686_s1 + $0x18] sm:$0xff] (!%p167_p3)  ;;  %vm394_vm4 = vcmask (!%p167_p3), 195584  }
   0x8   : > { %v228_v16 = vld [vmem:[%s686_s1 + $0x10] sm:$0xff] (!%p167_p3) }
   0xe   : > { %s694_s12 = smov (!%p201_p4, %s592_s12), 1 }
   0xf   : > { %s513_s16 = sshll.u32 %s694_s12, 5  ;;  %s512_s17 = sshll.u32 %s694_s12, 4 }
  0x10   : > { %s213_s20 = scalar_lea.vmem %s687_s2, %s513_s16  ;;  %s208_s23 = scalar_lea.vmem %s685_s0, %s512_s17 }
  0x11   : > { %v223_v1 = vld [vmem:[%s213_s20 + $0x8] sm:$0xff]  ;;  %v222_v2 = vld [vmem:[%s213_s20] sm:$0xff]  ;;  %v225_v4 = vld [vmem:[%s213_s20 + $0x18] sm:$0xff]  ;;  %s221_s7 = scalar_lea.vmem %s688_s3, %s513_s16 }
  0x12   : > { %237 = vperm.xlu1 %567, %v223_v1   ;;  %232 = vperm.xlu0 %566, %v222_v2   ;;  %v254_v3 = vld [vmem:[%s208_s23] sm:$0xff]  ;;  %v224_v5 = vld [vmem:[%s213_s20 + $0x10] sm:$0xff]  ;;  %v255_v6 = vld [vmem:[%s208_s23 + $0x8] sm:$0x3] }
  0x13   : > { %v531_v7 = vpack.c.bf16 %v255_v6, %v254_v3 }
  0x15   : > { %533 = vmatprep.subr.msk.bf16.mxu0 %vm532_vm2, %v531_v7  ;;  %537 = vmatprep.subr.msk.bf16.mxu1 %vm532_vm2, %v531_v7 }
  0x16   : > { %247 = vperm.xlu1 %567, %v225_v4   ;;  %242 = vperm.xlu0 %566, %v224_v5  }
  0x17   : > { %536 = vmatpush3.bf16.msk.msra.mxu0 %vm532_vm2, %v531_v7  ;;  %538 = vmatpush3.bf16.msk.msra.mxu1 %vm532_vm2, %v531_v7 }
  0x1a   : > { %569 = vset.pattern.permute.xlu1 %v604_v8  ;;  %568 = vset.pattern.permute.xlu0 %v604_v8 }
  0x1b   : > { %261 = vperm.xlu1 %569, %v223_v1   ;;  %257 = vperm.xlu0 %568, %v222_v2  }
  0x1f   : > { %265 = vperm.xlu1 %569, %v224_v5   ;;  %269 = vperm.xlu0 %568, %v225_v4  }
  0x91   : > { %v238_v11 = vpop.permute.xlu1 %237  ;;  %v233_v12 = vpop.permute.xlu0 %232 }
  0x92   : > { %v251_v13 = vmul.f32 %v238_v11, %v227_v9  ;;  %v250_v14 = vmul.f32 %v233_v12, %v226_v10 }
  0x94   : > { %525 = vmatprep.mubr.msk.f32.mxu0 %vm272_vm3, %v250_v14 }
  0x95   : > { %v248_v17 = vpop.permute.xlu1 %247  ;;  %v243_v18 = vpop.permute.xlu0 %242  ;;  %526 = vmatmul.mubr.msk.f32.vlgmr.msra.gmra.mrb[0].mxu0 %vm272_vm3, %v251_v13 }
  0x96   : > { %v253_v19 = vmul.f32 %v248_v17, %v229_v15  ;;  %v252_v20 = vmul.f32 %v243_v18, %v228_v16 }
  0x98   : > { %528 = vmatprep.mubr.msk.f32.mxu1 %vm272_vm3, %v252_v20 }
  0x99   : > { %529 = vmatmul.mubr.msk.f32.vlgmr.msra.gmra.mrb[0].mxu1 %vm272_vm3, %v253_v19 }
  0x9a   : > { %v258_v21 = vpop.permute.xlu0 %257  ;;  %v262_v22 = vpop.permute.xlu1 %261 }
  0x9e   : > { %v270_v28 = vpop.permute.xlu0 %269  ;;  %v266_v31 = vpop.permute.xlu1 %265 }
 0x168   : > { %v527_v23 = vpop.f32.mrb[0].mxu0 }
 0x169   : > { %v361_v24 = vadd.f32 %v527_v23, %v262_v22  ;;  %v355_v25 = vpop.f32.mrb[1].mxu0 }
 0x16a   : > { %v356_v26 = vadd.f32 %v355_v25, %v258_v21 }
 0x16b   : > { %v379_v27 = vmul.f32 0.70710677, %v361_v24  ;;  %v375_v39 = vmul.f32 0.5, %v361_v24 }
 0x16c   : > { %v378_v29 = vmul.f32 0.70710677, %v356_v26  ;;  %v530_v30 = vpop.f32.mrb[0].mxu1  ;;  %v374_v41 = vmul.f32 0.5, %v356_v26 }
 0x16d   : > { %570 = verf.f32 %v379_v27  ;;  %v371_v32 = vadd.f32 %v530_v30, %v270_v28  ;;  %v365_v33 = vpop.f32.mrb[1].mxu1 }
 0x16e   : > { %572 = verf.f32 %v378_v29  ;;  %v366_v34 = vadd.f32 %v365_v33, %v266_v31 }
 0x16f   : > { %v381_v35 = vmul.f32 0.70710677, %v371_v32  ;;  %v377_v47 = vmul.f32 0.5, %v371_v32 }
 0x170   : > { %v380_v36 = vmul.f32 0.70710677, %v366_v34  ;;  %v376_v49 = vmul.f32 0.5, %v366_v34 }
 0x171   : > { %574 = verf.f32 %v381_v35 }
 0x172   : > { %576 = verf.f32 %v380_v36 }
 0x177   : > { %v571_v37 = vpop.eup %570 }
 0x178   : > { %v573_v38 = vpop.eup %572  ;;  %v387_v40 = vadd.f32 1.0, %v571_v37 }
 0x179   : > { %v386_v42 = vadd.f32 1.0, %v573_v38 }
 0x17a   : > { %v391_v43 = vmul.f32 %v387_v40, %v375_v39 }
 0x17b   : > { %v575_v44 = vpop.eup %574  ;;  %v390_v45 = vmul.f32 %v386_v42, %v374_v41 }
 0x17c   : > { %v577_v46 = vpop.eup %576  ;;  %396 = vst.msk [vmem:[%s221_s7 + $0x8] sm:$0xff] %vm394_vm4, %v391_v43  ;;  %v389_v48 = vadd.f32 1.0, %v575_v44 }
 0x17d   : > { %395 = vst.msk [vmem:[%s221_s7] sm:$0xff] %vm394_vm4, %v390_v45  ;;  %v388_v50 = vadd.f32 1.0, %v577_v46 }
 0x17e   : > { %v393_v51 = vmul.f32 %v389_v48, %v377_v47 }
 0x17f   : > { %v392_v52 = vmul.f32 %v388_v50, %v376_v49 }
 0x180   : > { %398 = vst.msk [vmem:[%s221_s7 + $0x18] sm:$0xff] %vm394_vm4, %v393_v51 }
 0x181   : > { %397 = vst.msk [vmem:[%s221_s7 + $0x10] sm:$0xff] %vm394_vm4, %v392_v52 }
 0x182 PF: > { %s13_s14 = sadd.s32 1, %s600_s14   ;;  %s689_s12 = smov %s596_s13 }
 0x183   : > { %p10_p5 = scmp.ge.s32.totalorder %s13_s14, 4   ;;  %s690_s13 = smov %s692_s15 }
 0x185   :  { %12 = sbr.rel (!%p10_p5) target bundleno = 2 (0x2), region = 65 }

</bundles_post_ra>
